<compile_context>
chip_gen: v6e
topology: v6e:2x2x1
jax: 0.10.0
libtpu: 0.0.40
codegen_flags: <defaults>
</compile_context>

<pallas_src>
import functools

import jax
import jax.numpy as jnp
from jax.experimental import pallas as pl
from jax.experimental.pallas import tpu as pltpu


def _block_kernel(x_ref, u_ref, w0_ref, w1_ref, wu_ref, b_ref, o_ref):
    """One batch tile of the residual block (shapes are the lane-packed ones).

    x_ref : [TB, Fp]  f32 input tile (also the residual)
    u_ref : [TB, Fup] unmasked input tile (input dtype; cast in-kernel)
    w0_ref: [Fp, Fp]  pre-masked layer-0 weight, block-diag, [in, out]
    w1_ref: [Fp, Fp]  pre-masked layer-1 weight, block-diag, [in, out]
    wu_ref: [Fup, Fp] unmasked layer-1 weight,   block-diag, [in, out]
    b_ref : [2, Fp]   f32 biases; row 0 = tile(b0), row 1 = tile(b1 + bu)
    o_ref : [TB, Fp]  f32 output tile
    """
    x = x_ref[...]
    cdt = w0_ref.dtype

    # h = act(x); layers[0] masked linear (mask pre-folded into w0).
    h = jnp.maximum(x, 0.0).astype(cdt)
    h = jnp.dot(h, w0_ref[...], preferred_element_type=jnp.float32) + b_ref[0:1, :]

    # h = act(h); layers[1] masked part + unmasked part (cast of u hides
    # under the MXU; no wrapper-side cast pass).
    h = jnp.maximum(h, 0.0).astype(cdt)
    out = jnp.dot(h, w1_ref[...], preferred_element_type=jnp.float32)
    out = out + jnp.dot(u_ref[...].astype(cdt), wu_ref[...],
                        preferred_element_type=jnp.float32)

    # residual + fused (b1 + bu), all in f32, lane-dense unmasked store.
    o_ref[...] = (x.astype(jnp.float32) + out + b_ref[1:2, :]).astype(o_ref.dtype)


def _pick_pack_factor(B, F):
    """Rows packed per 128-lane row (power of two, divides B, F*p <= 128)."""
    if F >= 128 or 128 % F != 0:
        # TODO(synk): feature dims that don't divide 128 would need padded
        # packing; fall back to the plain layout.
        return 1
    p = 128 // F
    while p > 1 and B % p != 0:
        p //= 2
    return p


def _pick_row_tile(bp, block_b):
    """Largest row tile that divides `bp` exactly (multiple of 8, <= block_b).

    Prefers >= 4 grid steps when the batch is large enough so both v7x
    TensorCores get several steps under "parallel" megacore sharding; for
    small batches the whole thing is one tile (grid=(1,), zero step overhead).
    """
    if bp <= block_b:
        return bp
    cap = max(8, (min(block_b, bp) // 8) * 8)
    best = None
    for cand in range(cap, 7, -8):
        if bp % cand == 0:
            if best is None:
                best = cand
            if bp // cand >= 4:
                return cand
    return best if best is not None else bp


@functools.partial(jax.jit, static_argnames=("block_b", "compute_dtype"))
def partial_masked_residual_block(x, u,
                                  w0, mask0, b0,
                                  w1, mask1, b1,
                                  wu, bu,
                                  *, block_b=2048, compute_dtype=jnp.float32):
    """x: [B, F], u: [B, Fu].
    w0, w1, mask0, mask1: [F, F] (PyTorch [out, in] convention).
    wu: [F, Fu]. b0, b1, bu: [F].
    """
    B, F = x.shape
    Fu = u.shape[1]

    # ---- static parameter prep (true constant hoist) -----------------------
    # Fold masks into the weights, transpose to [in, out] for lane-dense
    # matmul outputs, fuse the two second-layer biases.
    w0m_t = (mask0 * w0).T.astype(compute_dtype)
    w1m_t = (mask1 * w1).T.astype(compute_dtype)
    wu_t = wu.T.astype(compute_dtype)
    b0f = b0.astype(jnp.float32)
    b1f = (b1 + bu).astype(jnp.float32)

    # ---- lane packing -------------------------------------------------------
    p = _pick_pack_factor(B, F)
    if p > 1:
        eye = jnp.eye(p, dtype=compute_dtype)
        w0k = jnp.kron(eye, w0m_t)            # [F*p, F*p] block-diagonal
        w1k = jnp.kron(eye, w1m_t)            # [F*p, F*p]
        wuk = jnp.kron(eye, wu_t)             # [Fu*p, F*p]
        b_stack = jnp.stack([jnp.tile(b0f, p), jnp.tile(b1f, p)], axis=0)
        x_in = x.reshape(B // p, F * p)       # free row-major reshape
        u_in = u.reshape(B // p, Fu * p)      # free row-major reshape
    else:
        w0k, w1k, wuk = w0m_t, w1m_t, wu_t
        b_stack = jnp.stack([b0f, b1f], axis=0)
        x_in, u_in = x, u

    Bp, Fp = x_in.shape
    Fup = u_in.shape[1]

    # ---- batch tiling (no padding: tile divides Bp or equals it) -----------
    tb = _pick_row_tile(Bp, block_b)
    grid = (Bp // tb,)

    # ---- VMEM budget --------------------------------------------------------
    cbytes = jnp.dtype(compute_dtype).itemsize
    resident = (2 * Fp * Fp + Fup * Fp) * cbytes + 2 * Fp * 4
    streams = 2 * tb * (Fp * x_in.dtype.itemsize        # x (double-buffered)
                        + Fup * u_in.dtype.itemsize     # u
                        + Fp * 4)                       # out
    vmem_limit = int(min(48 * 2 ** 20, max(2 * (resident + streams), 16 * 2 ** 20)))

    out = pl.pallas_call(
        _block_kernel,
        out_shape=jax.ShapeDtypeStruct((Bp, Fp), jnp.float32),
        grid=grid,
        in_specs=[
            pl.BlockSpec((tb, Fp), lambda i: (i, 0)),     # x tile (streamed)
            pl.BlockSpec((tb, Fup), lambda i: (i, 0)),    # u tile (streamed)
            pl.BlockSpec((Fp, Fp), lambda i: (0, 0)),     # kron(I, mask0*W0^T)
            pl.BlockSpec((Fp, Fp), lambda i: (0, 0)),     # kron(I, mask1*W1^T)
            pl.BlockSpec((Fup, Fp), lambda i: (0, 0)),    # kron(I, Wu^T)
            pl.BlockSpec((2, Fp), lambda i: (0, 0)),      # stacked biases
        ],
        out_specs=pl.BlockSpec((tb, Fp), lambda i: (i, 0)),
        compiler_params=pltpu.CompilerParams(
            dimension_semantics=("parallel",),
            vmem_limit_bytes=vmem_limit,
        ),
    )(x_in, u_in, w0k, w1k, wuk, b_stack)

    return out.reshape(B, F)   # free row-major reshape back


def reference(x, u, w0, mask0, b0, w1, mask1, b1, wu, bu):
    h = jnp.maximum(x, 0.0)
    h = h @ (mask0 * w0).T + b0
    h = jnp.maximum(h, 0.0)
    out = h @ (mask1 * w1).T + b1 + u @ wu.T + bu
    return x + out


if __name__ == "__main__":
    B, F, Fu = 512, 32, 16

    key = jax.random.PRNGKey(0)
    ks = jax.random.split(key, 8)

    x = jax.random.normal(ks[0], (B, F), dtype=jnp.float32)
    u = jax.random.normal(ks[1], (B, Fu), dtype=jnp.float32)

    # Deterministic parameters (shapes follow nn.Linear / Parameter in __init__).
    w0 = jax.random.normal(ks[2], (F, F), dtype=jnp.float32) * 0.1
    b0 = jax.random.normal(ks[3], (F,), dtype=jnp.float32) * 0.1
    w1 = jax.random.normal(ks[4], (F, F), dtype=jnp.float32) * 0.1
    b1 = jax.random.normal(ks[5], (F,), dtype=jnp.float32) * 0.1
    wu = jax.random.normal(ks[6], (F, Fu), dtype=jnp.float32) * 0.1
    bu = jax.random.normal(ks[7], (F,), dtype=jnp.float32) * 0.1

    # Deterministic autoregressive-style mask (strictly lower triangular),
    # stored in the buffer's [out_features, in_features] orientation.
    mask = jnp.tril(jnp.ones((F, F), dtype=jnp.float32), k=-1)
    mask0 = mask
    mask1 = mask

    out = partial_masked_residual_block(
        x, u, w0, mask0, b0, w1, mask1, b1, wu, bu)
    out = jax.block_until_ready(out)

    ref = reference(x, u, w0, mask0, b0, w1, mask1, b1, wu, bu)
    assert out.shape == (B, F)
    assert jnp.allclose(out, ref, atol=1e-4, rtol=1e-4)

    print("KERNEL_OK")
</pallas_src>

<mosaic_0001>
module attributes {stable_mosaic.version = 11 : i64} {
  func.func @_block_kernel(%arg0: i32, %arg1: memref<128x128xf32, #tpu.memory_space<vmem>>, %arg2: memref<128x64xf32, #tpu.memory_space<vmem>>, %arg3: memref<128x128xf32, #tpu.memory_space<vmem>>, %arg4: memref<128x128xf32, #tpu.memory_space<vmem>>, %arg5: memref<64x128xf32, #tpu.memory_space<vmem>>, %arg6: memref<2x128xf32, #tpu.memory_space<vmem>>, %arg7: memref<128x128xf32, #tpu.memory_space<vmem>>) attributes {dimension_semantics = [#tpu.dimension_semantics<parallel>], iteration_bounds = array<i64: 1>, scalar_prefetch = 0 : i64, scratch_operands = 0 : i64, tpu.core_type = #tpu.core_type<tc>, window_params = [{transform_indices = @transform_0, window_bounds = array<i64: 128, 128>}, {transform_indices = @transform_1, window_bounds = array<i64: 128, 64>}, {pipeline_mode = #tpu.pipeline_mode<synchronous>, transform_indices = @transform_2, window_bounds = array<i64: 128, 128>}, {pipeline_mode = #tpu.pipeline_mode<synchronous>, transform_indices = @transform_3, window_bounds = array<i64: 128, 128>}, {pipeline_mode = #tpu.pipeline_mode<synchronous>, transform_indices = @transform_4, window_bounds = array<i64: 64, 128>}, {pipeline_mode = #tpu.pipeline_mode<synchronous>, transform_indices = @transform_5, window_bounds = array<i64: 2, 128>}, {transform_indices = @transform_6, window_bounds = array<i64: 128, 128>}]} {
    %c0 = arith.constant 0 : index
    %c0_0 = arith.constant 0 : index
    %0 = vector.load %arg1[%c0, %c0_0] : memref<128x128xf32, #tpu.memory_space<vmem>>, vector<128x128xf32>
    %cst = arith.constant 0.000000e+00 : f32
    %1 = vector.broadcast %cst : f32 to vector<128x128xf32>
    %2 = arith.maximumf %0, %1 : vector<128x128xf32>
    %c0_1 = arith.constant 0 : index
    %c0_2 = arith.constant 0 : index
    %3 = vector.load %arg3[%c0_1, %c0_2] : memref<128x128xf32, #tpu.memory_space<vmem>>, vector<128x128xf32>
    %cst_3 = arith.constant dense<0.000000e+00> : vector<128x128xf32>
    %4 = tpu.matmul %2, %3, %cst_3 {dimension_numbers = #tpu.dot_dimension_numbers<[1], [0], [0], [1], [0, 0, 1, 1], [], []>} : vector<128x128xf32>, vector<128x128xf32>, vector<128x128xf32> -> vector<128x128xf32>
    %c0_4 = arith.constant 0 : index
    %c0_5 = arith.constant 0 : index
    %5 = vector.load %arg6[%c0_4, %c0_5] : memref<2x128xf32, #tpu.memory_space<vmem>>, vector<1x128xf32>
    %6 = vector.broadcast %5 : vector<1x128xf32> to vector<128x128xf32>
    %7 = arith.addf %4, %6 : vector<128x128xf32>
    %cst_6 = arith.constant 0.000000e+00 : f32
    %8 = vector.broadcast %cst_6 : f32 to vector<128x128xf32>
    %9 = arith.maximumf %7, %8 : vector<128x128xf32>
    %c0_7 = arith.constant 0 : index
    %c0_8 = arith.constant 0 : index
    %10 = vector.load %arg4[%c0_7, %c0_8] : memref<128x128xf32, #tpu.memory_space<vmem>>, vector<128x128xf32>
    %cst_9 = arith.constant dense<0.000000e+00> : vector<128x128xf32>
    %11 = tpu.matmul %9, %10, %cst_9 {dimension_numbers = #tpu.dot_dimension_numbers<[1], [0], [0], [1], [0, 0, 1, 1], [], []>} : vector<128x128xf32>, vector<128x128xf32>, vector<128x128xf32> -> vector<128x128xf32>
    %c0_10 = arith.constant 0 : index
    %c0_11 = arith.constant 0 : index
    %12 = vector.load %arg2[%c0_10, %c0_11] : memref<128x64xf32, #tpu.memory_space<vmem>>, vector<128x64xf32>
    %c0_12 = arith.constant 0 : index
    %c0_13 = arith.constant 0 : index
    %13 = vector.load %arg5[%c0_12, %c0_13] : memref<64x128xf32, #tpu.memory_space<vmem>>, vector<64x128xf32>
    %cst_14 = arith.constant dense<0.000000e+00> : vector<128x128xf32>
    %14 = tpu.matmul %12, %13, %cst_14 {dimension_numbers = #tpu.dot_dimension_numbers<[1], [0], [0], [1], [0, 0, 1, 1], [], []>} : vector<128x64xf32>, vector<64x128xf32>, vector<128x128xf32> -> vector<128x128xf32>
    %15 = arith.addf %11, %14 : vector<128x128xf32>
    %16 = arith.addf %0, %15 : vector<128x128xf32>
    %c1 = arith.constant 1 : index
    %c0_15 = arith.constant 0 : index
    %17 = vector.load %arg6[%c1, %c0_15] : memref<2x128xf32, #tpu.memory_space<vmem>>, vector<1x128xf32>
    %18 = vector.broadcast %17 : vector<1x128xf32> to vector<128x128xf32>
    %19 = arith.addf %16, %18 : vector<128x128xf32>
    %c0_16 = arith.constant 0 : index
    %c0_17 = arith.constant 0 : index
    %20 = vector.load %arg7[%c0_16, %c0_17] : memref<128x128xf32, #tpu.memory_space<vmem>>, vector<128x128xf32>
    tpu.vector_store %arg7[%c0_16, %c0_17], %19 {strides = array<i32>} : memref<128x128xf32, #tpu.memory_space<vmem>>, vector<128x128xf32>,
    return
  }
  func.func @transform_0(%arg0: i32) -> (i32, i32) {
    %c0_i32 = arith.constant 0 : i32
    %c0_i32_0 = arith.constant 0 : i32
    return %arg0, %c0_i32 : i32, i32
  }
  func.func @transform_1(%arg0: i32) -> (i32, i32) {
    %c0_i32 = arith.constant 0 : i32
    %c0_i32_0 = arith.constant 0 : i32
    return %arg0, %c0_i32 : i32, i32
  }
  func.func @transform_2(%arg0: i32) -> (i32, i32) {
    %c0_i32 = arith.constant 0 : i32
    %c0_i32_0 = arith.constant 0 : i32
    %c0_i32_1 = arith.constant 0 : i32
    return %c0_i32, %c0_i32_0 : i32, i32
  }
  func.func @transform_3(%arg0: i32) -> (i32, i32) {
    %c0_i32 = arith.constant 0 : i32
    %c0_i32_0 = arith.constant 0 : i32
    %c0_i32_1 = arith.constant 0 : i32
    return %c0_i32, %c0_i32_0 : i32, i32
  }
  func.func @transform_4(%arg0: i32) -> (i32, i32) {
    %c0_i32 = arith.constant 0 : i32
    %c0_i32_0 = arith.constant 0 : i32
    %c0_i32_1 = arith.constant 0 : i32
    return %c0_i32, %c0_i32_0 : i32, i32
  }
  func.func @transform_5(%arg0: i32) -> (i32, i32) {
    %c0_i32 = arith.constant 0 : i32
    %c0_i32_0 = arith.constant 0 : i32
    %c0_i32_1 = arith.constant 0 : i32
    return %c0_i32, %c0_i32_0 : i32, i32
  }
  func.func @transform_6(%arg0: i32) -> (i32, i32) {
    %c0_i32 = arith.constant 0 : i32
    %c0_i32_0 = arith.constant 0 : i32
    return %arg0, %c0_i32 : i32, i32
  }
}

</mosaic_0001>

<bundles_post_ra>
// kernel: tile.17
= control target key start
LH: loop header
LB: loop body
LE: loop exit
PB: predicated region body
PF: predicated region fallthrough
CT: control target
= control target key end

     0   :  { %s22_s0 = inlined_call_operand.vmem [shape: f32[32], index: 0, kind: input, shape index: {}]   ;;  %s23_s1 = inlined_call_operand.vmem [shape: f32[4,32], index: 1, kind: output, shape index: {}]  }
   0x1   :  { %v4_v0 = vld [vmem:[%s22_s0] ss:$0 sm:$0xff] }
   0x2   :  { %5 = vst [vmem:[%s23_s1] sm:$0xf] %v4_v0 }

// kernel: tile.19
= control target key start
LH: loop header
LB: loop body
LE: loop exit
PB: predicated region body
PF: predicated region fallthrough
CT: control target
= control target key end

     0   :  { %vm8_vm0 = vcmask 261120   ;;  %s40_s8 = smov 32   ;;  %s41_s9 = smov 64   ;;  %vm14_vm1 = vcmask 1048320   ;;  %vm20_vm2 = vcmask 785920   ;;  %vm26_vm3 = vcmask 523520   ;;  %s58_s0 = inlined_call_operand.vmem [shape: f32[4,32], index: 0, kind: input, shape index: {}]   ;;  %s59_s1 = inlined_call_operand.vmem [shape: f32[1,128], index: 1, kind: output, shape index: {}]  }
   0x1   :  { %v5_v0 = vld [vmem:[%s58_s0] sm:$0xf]  ;;  %s39_s0 = smov 96  }
   0x2   :  { %6 = vst [vmem:[#allocation1] sm:$0xf] %v5_v0 }
   0x9   :  { %v11_v1 = vld [vmem:[#allocation1 + $0x3] sm:$0x1]   ;;  %v23_v2 = vld [vmem:[#allocation1 + $0x1] sm:$0x1]   ;;  %v7_v3 = vld [vmem:[#allocation1] sm:$0x1]  }
   0xa   :  { %12 = vrot.lane.b32.xlu0 %v11_v1, %s39_s0  ;;  %24 = vrot.lane.b32.xlu1 %v23_v2, %s40_s8  ;;  %v17_v4 = vld [vmem:[#allocation1 + $0x2] sm:$0x1]   ;;  %9 = vst.msk [vmem:[#allocation0] sm:$0x1] %vm8_vm0, %v7_v3  }
   0xe   :  { %18 = vrot.lane.b32.xlu0 %v17_v4, %s41_s9 }
  0x7c   :  { %v13_v5 = vpop.permute.xlu0 %12   ;;  %v25_v6 = vpop.permute.xlu1 %24  }
  0x7d   :  { %15 = vst.msk [vmem:[#allocation0] sm:$0x1] %vm14_vm1, %v13_v5  }
  0x80   :  { %v19_v7 = vpop.permute.xlu0 %18  }
  0x81   :  { %21 = vst.msk [vmem:[#allocation0] sm:$0x1] %vm20_vm2, %v19_v7  }
  0x82   :  { %27 = vst.msk [vmem:[#allocation0] sm:$0x1] %vm26_vm3, %v25_v6  }
  0x89   :  { %v32_v8 = vld [vmem:[#allocation0] sm:$0x1] }
  0x8a   :  { %35 = vst [vmem:[%s59_s1] sm:$0x1] %v32_v8 }

// kernel: partial_masked_residual_block.1
= control target key start
LH: loop header
LB: loop body
LE: loop exit
PB: predicated region body
PF: predicated region fallthrough
CT: control target
= control target key end

     0   :  { %vm277_vm0 = vcmask 523264   ;;  %s1378_s2 = inlined_call_operand.vmem [shape: f32[128,128], index: 2, kind: input, shape index: {}]   ;;  %s1379_s0 = inlined_call_operand.vmem [shape: f32[128,128], index: 0, kind: input, shape index: {}]   ;;  %s1380_s4 = inlined_call_operand.vmem [shape: f32[64,128], index: 4, kind: input, shape index: {}]   ;;  %s1381_s1 = inlined_call_operand.vmem [shape: f32[128,64], index: 1, kind: input, shape index: {}]   ;;  %s1382_s3 = inlined_call_operand.vmem [shape: f32[128,128], index: 3, kind: input, shape index: {}]   ;;  %s1383_s5 = inlined_call_operand.vmem [shape: f32[2,128], index: 5, kind: input, shape index: {}]   ;;  %s1384_s6 = inlined_call_operand.vmem [shape: f32[128,128], index: 6, kind: output, shape index: {}]  }
   0x1   :  { %v70_v0 = vld [vmem:[%s1378_s2 + $0x78] sm:$0xff]  ;;  %v69_v1 = vld [vmem:[%s1378_s2 + $0x70] sm:$0xff]  ;;  %v68_v2 = vld [vmem:[%s1378_s2 + $0x68] sm:$0xff] }
   0x2   :  { %779 = vmatprep.subr.mxu0 %v70_v0  ;;  %v67_v3 = vld [vmem:[%s1378_s2 + $0x60] sm:$0xff]  ;;  %v66_v5 = vld [vmem:[%s1378_s2 + $0x58] sm:$0xff]  ;;  %v65_v7 = vld [vmem:[%s1378_s2 + $0x50] sm:$0xff] }
   0x3   :  { %780 = vmatpush3.msra.mxu0 %v70_v0  ;;  %v1013_v4 = vld [vmem:[%s1379_s0] sm:$0xff]  ;;  %v64_v8 = vld [vmem:[%s1378_s2 + $0x48] sm:$0xff]  ;;  %v276_v9 = vld [vmem:[%s1380_s4 + $0x38] sm:$0xff] }
   0x4   :  { %781 = vmatprep.subr.mxu0 %v69_v1  ;;  %v39_v6 = vmax.f32 %v1013_v4, 0.0  ;;  %835 = vmatprep.subr.mxu1 %v276_v9  ;;  %v275_v10 = vld [vmem:[%s1380_s4 + $0x30] sm:$0xff]  ;;  %v63_v11 = vld [vmem:[%s1378_s2 + $0x40] sm:$0xff]  ;;  %v274_v12 = vld [vmem:[%s1380_s4 + $0x28] sm:$0xff] }
   0x5   :  { %782 = vmatpush3.msra.mxu0 %v69_v1  ;;  %836 = vmatpush3.msra.mxu1 %v276_v9  ;;  %v62_v13 = vld [vmem:[%s1378_s2 + $0x38] sm:$0xff]  ;;  %v273_v14 = vld [vmem:[%s1380_s4 + $0x20] sm:$0xff]  ;;  %v61_v15 = vld [vmem:[%s1378_s2 + $0x30] sm:$0xff] }
   0x6   :  { %783 = vmatprep.subr.mxu0 %v68_v2  ;;  %811 = vmatprep.mubr.f32.mxu0 %v39_v6  ;;  %v272_v16 = vld [vmem:[%s1380_s4 + $0x18] sm:$0xff]  ;;  %v60_v17 = vld [vmem:[%s1378_s2 + $0x28] sm:$0xff]  ;;  %v271_v18 = vld [vmem:[%s1380_s4 + $0x10] sm:$0xff] }
   0x7   :  { %784 = vmatpush3.msra.mxu0 %v68_v2  ;;  %837 = vmatprep.subr.mxu1 %v275_v10  ;;  %v59_v19 = vld [vmem:[%s1378_s2 + $0x20] sm:$0xff]  ;;  %v270_v20 = vld [vmem:[%s1380_s4 + $0x8] sm:$0xff]  ;;  %v58_v21 = vld [vmem:[%s1378_s2 + $0x18] sm:$0xff] }
   0x8   :  { %785 = vmatprep.subr.mxu0 %v67_v3  ;;  %838 = vmatpush3.msra.mxu1 %v275_v10  ;;  %v269_v22 = vld [vmem:[%s1380_s4] sm:$0xff]  ;;  %v57_v23 = vld [vmem:[%s1378_s2 + $0x10] sm:$0xff]  ;;  %v254_v25 = vld [vmem:[%s1381_s1 + $0x8] sm:$0xff] }
   0x9   :  { %786 = vmatpush3.msra.mxu0 %v67_v3  ;;  %839 = vmatprep.subr.mxu1 %v274_v12  ;;  %v253_v24 = vld [vmem:[%s1381_s1] sm:$0xff]  ;;  %v56_v26 = vld [vmem:[%s1378_s2 + $0x8] sm:$0xff]  ;;  %v1087_v28 = vld [vmem:[%s1379_s0 + $0x10] sm:$0xff] }
   0xa   :  { %787 = vmatprep.subr.mxu0 %v66_v5  ;;  %840 = vmatpush3.msra.mxu1 %v274_v12  ;;  %v1082_v27 = vld [vmem:[%s1379_s0 + $0x8] sm:$0xff]  ;;  %v55_v29 = vld [vmem:[%s1378_s2] sm:$0xff]  ;;  %v252_v30 = vld [vmem:[%s1382_s3 + $0x78] sm:$0xff]  ;;  %v41_v33 = vmax.f32 %v1087_v28, 0.0 }
   0xb   :  { %788 = vmatpush3.msra.mxu0 %v66_v5  ;;  %841 = vmatprep.subr.mxu1 %v273_v14  ;;  %v255_v31 = vld [vmem:[%s1381_s1 + $0x10] sm:$0xff]  ;;  %v40_v32 = vmax.f32 %v1082_v27, 0.0  ;;  %v1105_v34 = vld [vmem:[%s1379_s0 + $0x18] sm:$0xff]  ;;  %v1110_v35 = vld [vmem:[%s1379_s0 + $0x20] sm:$0xff] }
   0xc   :  { %789 = vmatprep.subr.mxu0 %v65_v7  ;;  %842 = vmatpush3.msra.mxu1 %v273_v14  ;;  %v251_v36 = vld [vmem:[%s1382_s3 + $0x70] sm:$0xff]  ;;  %v256_v37 = vld [vmem:[%s1381_s1 + $0x18] sm:$0xff]  ;;  %v42_v38 = vmax.f32 %v1105_v34, 0.0  ;;  %v43_v39 = vmax.f32 %v1110_v35, 0.0  ;;  %v1124_v40 = vld [vmem:[%s1379_s0 + $0x28] sm:$0xff] }
   0xd   :  { %790 = vmatpush3.msra.mxu0 %v65_v7  ;;  %843 = vmatprep.subr.mxu1 %v272_v16  ;;  %v250_v41 = vld [vmem:[%s1382_s3 + $0x68] sm:$0xff]  ;;  %v1132_v42 = vld [vmem:[%s1379_s0 + $0x30] sm:$0xff]  ;;  %v249_v43 = vld [vmem:[%s1382_s3 + $0x60] sm:$0xff]  ;;  %v44_v44 = vmax.f32 %v1124_v40, 0.0 }
   0xe   :  { %791 = vmatprep.subr.mxu0 %v64_v8  ;;  %844 = vmatpush3.msra.mxu1 %v272_v16  ;;  %v45_v45 = vmax.f32 %v1132_v42, 0.0  ;;  %v1143_v46 = vld [vmem:[%s1379_s0 + $0x38] sm:$0xff]  ;;  %v1151_v48 = vld [vmem:[%s1379_s0 + $0x40] sm:$0xff]  ;;  %v247_v49 = vld [vmem:[%s1382_s3 + $0x50] sm:$0xff] }
   0xf   :  { %792 = vmatpush3.msra.mxu0 %v64_v8  ;;  %845 = vmatprep.subr.mxu1 %v271_v18  ;;  %v248_v47 = vld [vmem:[%s1382_s3 + $0x58] sm:$0xff]  ;;  %v257_v50 = vld [vmem:[%s1381_s1 + $0x20] sm:$0xff]  ;;  %v46_v51 = vmax.f32 %v1143_v46, 0.0  ;;  %v47_v52 = vmax.f32 %v1151_v48, 0.0  ;;  %v1164_v53 = vld [vmem:[%s1379_s0 + $0x48] sm:$0xff] }
  0x10   :  { %793 = vmatprep.subr.mxu0 %v63_v11  ;;  %846 = vmatpush3.msra.mxu1 %v271_v18  ;;  %v246_v54 = vld [vmem:[%s1382_s3 + $0x48] sm:$0xff]  ;;  %v1172_v55 = vld [vmem:[%s1379_s0 + $0x50] sm:$0xff]  ;;  %v245_v57 = vld [vmem:[%s1382_s3 + $0x40] sm:$0xff]  ;;  %v48_v58 = vmax.f32 %v1164_v53, 0.0 }
  0x11   :  { %794 = vmatpush3.msra.mxu0 %v63_v11  ;;  %847 = vmatprep.subr.mxu1 %v270_v20  ;;  %v258_v56 = vld [vmem:[%s1381_s1 + $0x28] sm:$0xff]  ;;  %v49_v59 = vmax.f32 %v1172_v55, 0.0  ;;  %v1186_v60 = vld [vmem:[%s1379_s0 + $0x58] sm:$0xff]  ;;  %v1191_v61 = vld [vmem:[%s1379_s0 + $0x60] sm:$0xff] }
  0x12   :  { %795 = vmatprep.subr.mxu0 %v62_v13  ;;  %848 = vmatpush3.msra.mxu1 %v270_v20  ;;  %v244_v62 = vld [vmem:[%s1382_s3 + $0x38] sm:$0xff]  ;;  %v259_v63 = vld [vmem:[%s1381_s1 + $0x30] sm:$0xff]  ;;  %v50_v0 = vmax.f32 %v1186_v60, 0.0  ;;  %v51_v1 = vmax.f32 %v1191_v61, 0.0  ;;  %v1205_v2 = vld [vmem:[%s1379_s0 + $0x68] sm:$0xff] }
  0x13   :  { %796 = vmatpush3.msra.mxu0 %v62_v13  ;;  %849 = vmatprep.subr.mxu1 %v269_v22  ;;  %v260_v3 = vld [vmem:[%s1381_s1 + $0x38] sm:$0xff]  ;;  %v1213_v5 = vld [vmem:[%s1379_s0 + $0x70] sm:$0xff]  ;;  %v52_v7 = vmax.f32 %v1205_v2, 0.0  ;;  %v242_v10 = vld [vmem:[%s1382_s3 + $0x28] sm:$0xff] }
  0x14   :  { %797 = vmatprep.subr.mxu0 %v61_v15  ;;  %850 = vmatpush3.msra.mxu1 %v269_v22  ;;  %v243_v6 = vld [vmem:[%s1382_s3 + $0x30] sm:$0xff]  ;;  %v53_v8 = vmax.f32 %v1213_v5, 0.0  ;;  %v1225_v9 = vld [vmem:[%s1379_s0 + $0x78] sm:$0xff]  ;;  %v261_v11 = vld [vmem:[%s1381_s1 + $0x40] sm:$0xff] }
  0x15   :  { %798 = vmatpush3.msra.mxu0 %v61_v15  ;;  %851 = vmatprep.mubr.msk.f32.mxu1 %vm277_vm0, %v253_v24  ;;  %v54_v12 = vmax.f32 %v1225_v9, 0.0  ;;  %v262_v13 = vld [vmem:[%s1381_s1 + $0x48] sm:$0xff]  ;;  %v241_v14 = vld [vmem:[%s1382_s3 + $0x20] sm:$0xff]  ;;  %v240_v15 = vld [vmem:[%s1382_s3 + $0x18] sm:$0xff] }
  0x16   :  { %799 = vmatprep.subr.mxu0 %v60_v17  ;;  %852 = vmatmul.mubr.msk.f32.vlgmr.msra.gmra.mxu1 %vm277_vm0, %v254_v25  ;;  %v263_v16 = vld [vmem:[%s1381_s1 + $0x50] sm:$0xff]  ;;  %v265_v20 = vld [vmem:[%s1381_s1 + $0x60] sm:$0xff]  ;;  %v268_v24 = vld [vmem:[%s1381_s1 + $0x78] sm:$0xff] }
  0x17   :  { %800 = vmatpush3.msra.mxu0 %v60_v17  ;;  %931 = vmatprep.subr.mxu1 %v252_v30  ;;  %v264_v17 = vld [vmem:[%s1381_s1 + $0x58] sm:$0xff]  ;;  %v239_v18 = vld [vmem:[%s1382_s3 + $0x10] sm:$0xff]  ;;  %v237_v22 = vld [vmem:[%s1382_s3] sm:$0xff] }
  0x18   :  { %801 = vmatprep.subr.mxu0 %v59_v19  ;;  %947 = vmatpush3.msra.mxu1 %v252_v30  ;;  %v673_v25 = vld [vmem:[%s1383_s5] ss:$0 sm:$0xff] }
  0x19   :  { %802 = vmatpush3.msra.mxu0 %v59_v19  ;;  %854 = vmatprep.mubr.msk.f32.mxu1 %vm277_vm0, %v255_v31  ;;  %v238_v19 = vld [vmem:[%s1382_s3 + $0x8] sm:$0xff] }
  0x1a   :  { %803 = vmatprep.subr.mxu0 %v58_v21  ;;  %932 = vmatprep.subr.mxu1 %v251_v36 }
  0x1b   :  { %804 = vmatpush3.msra.mxu0 %v58_v21  ;;  %855 = vmatmul.mubr.msk.f32.gmra.mxu1 %vm277_vm0, %v256_v37  ;;  %v266_v21 = vld [vmem:[%s1381_s1 + $0x68] sm:$0xff] }
  0x1c   :  { %805 = vmatprep.subr.mxu0 %v57_v23  ;;  %948 = vmatpush3.msra.mxu1 %v251_v36 }
  0x1d   :  { %806 = vmatpush3.msra.mxu0 %v57_v23  ;;  %933 = vmatprep.subr.mxu1 %v250_v41  ;;  %v267_v23 = vld [vmem:[%s1381_s1 + $0x70] sm:$0xff] }
  0x1e   :  { %807 = vmatprep.subr.mxu0 %v56_v26  ;;  %949 = vmatpush3.msra.mxu1 %v250_v41 }
  0x1f   :  { %808 = vmatpush3.msra.mxu0 %v56_v26  ;;  %857 = vmatprep.mubr.msk.f32.mxu1 %vm277_vm0, %v257_v50 }
  0x20   :  { %809 = vmatprep.subr.mxu0 %v55_v29  ;;  %934 = vmatprep.subr.mxu1 %v249_v43 }
  0x21   :  { %810 = vmatpush3.msra.mxu0 %v55_v29  ;;  %858 = vmatmul.mubr.msk.f32.gmra.mxu1 %vm277_vm0, %v258_v56 }
  0x22   :  { %812 = vmatmul.mubr.f32.vlgmr.msra.gmra.mxu0 %v40_v32  ;;  %875 = vmatprep.subr.mxu0 %v252_v30 }
  0x23   :  { %814 = vmatprep.mubr.f32.mxu0 %v41_v33  ;;  %876 = vmatpush3.msra.mxu0 %v252_v30 }
  0x24   :  { %877 = vmatprep.subr.mxu0 %v251_v36  ;;  %950 = vmatpush3.msra.mxu1 %v249_v43 }
  0x25   :  { %878 = vmatpush3.msra.mxu0 %v251_v36  ;;  %935 = vmatprep.subr.mxu1 %v248_v47 }
  0x26   :  { %815 = vmatmul.mubr.f32.gmra.mxu0 %v42_v38  ;;  %879 = vmatprep.subr.mxu0 %v250_v41 }
  0x27   :  { %817 = vmatprep.mubr.f32.mxu0 %v43_v39  ;;  %880 = vmatpush3.msra.mxu0 %v250_v41 }
  0x28   :  { %881 = vmatprep.subr.mxu0 %v249_v43  ;;  %951 = vmatpush3.msra.mxu1 %v248_v47 }
  0x29   :  { %882 = vmatpush3.msra.mxu0 %v249_v43  ;;  %860 = vmatprep.mubr.msk.f32.mxu1 %vm277_vm0, %v259_v63 }
  0x2a   :  { %818 = vmatmul.mubr.f32.gmra.mxu0 %v44_v44  ;;  %883 = vmatprep.subr.mxu0 %v248_v47 }
  0x2b   :  { %820 = vmatprep.mubr.f32.mxu0 %v45_v45  ;;  %884 = vmatpush3.msra.mxu0 %v248_v47 }
  0x2c   :  { %885 = vmatprep.subr.mxu0 %v247_v49  ;;  %936 = vmatprep.subr.mxu1 %v247_v49 }
  0x2d   :  { %886 = vmatpush3.msra.mxu0 %v247_v49  ;;  %861 = vmatmul.mubr.msk.f32.gmra.mxu1 %vm277_vm0, %v260_v3 }
  0x2e   :  { %821 = vmatmul.mubr.f32.gmra.mxu0 %v46_v51  ;;  %887 = vmatprep.subr.mxu0 %v246_v54 }
  0x2f   :  { %823 = vmatprep.mubr.f32.mxu0 %v47_v52  ;;  %888 = vmatpush3.msra.mxu0 %v246_v54 }
  0x30   :  { %889 = vmatprep.subr.mxu0 %v245_v57  ;;  %952 = vmatpush3.msra.mxu1 %v247_v49 }
  0x31   :  { %890 = vmatpush3.msra.mxu0 %v245_v57  ;;  %937 = vmatprep.subr.mxu1 %v246_v54 }
  0x32   :  { %824 = vmatmul.mubr.f32.gmra.mxu0 %v48_v58  ;;  %891 = vmatprep.subr.mxu0 %v244_v62 }
  0x33   :  { %826 = vmatprep.mubr.f32.mxu0 %v49_v59  ;;  %892 = vmatpush3.msra.mxu0 %v244_v62 }
  0x34   :  { %893 = vmatprep.subr.mxu0 %v243_v6  ;;  %953 = vmatpush3.msra.mxu1 %v246_v54 }
  0x35   :  { %894 = vmatpush3.msra.mxu0 %v243_v6  ;;  %863 = vmatprep.mubr.msk.f32.mxu1 %vm277_vm0, %v261_v11 }
  0x36   :  { %827 = vmatmul.mubr.f32.gmra.mxu0 %v50_v0  ;;  %895 = vmatprep.subr.mxu0 %v242_v10 }
  0x37   :  { %829 = vmatprep.mubr.f32.mxu0 %v51_v1  ;;  %938 = vmatprep.subr.mxu1 %v245_v57 }
  0x38   :  { %896 = vmatpush3.msra.mxu0 %v242_v10  ;;  %864 = vmatmul.mubr.msk.f32.gmra.mxu1 %vm277_vm0, %v262_v13 }
  0x39   :  { %897 = vmatprep.subr.mxu0 %v241_v14  ;;  %954 = vmatpush3.msra.mxu1 %v245_v57 }
  0x3a   :  { %830 = vmatmul.mubr.f32.gmra.mxu0 %v52_v7  ;;  %939 = vmatprep.subr.mxu1 %v244_v62 }
  0x3b   :  { %832 = vmatprep.mubr.f32.mxu0 %v53_v8  ;;  %898 = vmatpush3.msra.mxu0 %v241_v14 }
  0x3c   :  { %955 = vmatpush3.msra.mxu1 %v244_v62  ;;  %899 = vmatprep.subr.mxu0 %v240_v15 }
  0x3d   :  { %940 = vmatprep.subr.mxu1 %v243_v6  ;;  %866 = vmatprep.mubr.msk.f32.mxu1 %vm277_vm0, %v263_v16 }
  0x3e   :  { %833 = vmatmul.mubr.f32.gmra.mxu0 %v54_v12  ;;  %956 = vmatpush3.msra.mxu1 %v243_v6 }
  0x3f   :  { %941 = vmatprep.subr.mxu1 %v242_v10  ;;  %900 = vmatpush3.msra.mxu0 %v240_v15 }
  0x40   :  { %957 = vmatpush3.msra.mxu1 %v242_v10  ;;  %901 = vmatprep.subr.mxu0 %v239_v18 }
  0x41   :  { %942 = vmatprep.subr.mxu1 %v241_v14  ;;  %867 = vmatmul.mubr.msk.f32.gmra.mxu1 %vm277_vm0, %v264_v17 }
  0x42   :  { %958 = vmatpush3.msra.mxu1 %v241_v14  ;;  %902 = vmatpush3.msra.mxu0 %v239_v18 }
  0x43   :  { %943 = vmatprep.subr.mxu1 %v240_v15  ;;  %903 = vmatprep.subr.mxu0 %v238_v19 }
  0x44   :  { %959 = vmatpush3.msra.mxu1 %v240_v15  ;;  %869 = vmatprep.mubr.msk.f32.mxu1 %vm277_vm0, %v265_v20 }
  0x45   :  { %944 = vmatprep.subr.mxu1 %v239_v18  ;;  %904 = vmatpush3.msra.mxu0 %v238_v19 }
  0x46   :  { %870 = vmatmul.mubr.msk.f32.gmra.mxu1 %vm277_vm0, %v266_v21  ;;  %905 = vmatprep.subr.mxu0 %v237_v22 }
  0x47   :  { %906 = vmatpush3.msra.mxu0 %v237_v22  ;;  %960 = vmatpush3.msra.mxu1 %v239_v18 }
  0x48   :  { %945 = vmatprep.subr.mxu1 %v238_v19  ;;  %872 = vmatprep.mubr.msk.f32.mxu1 %vm277_vm0, %v267_v23 }
  0x49   :  { %961 = vmatpush3.msra.mxu1 %v238_v19 }
  0x4a   :  { %873 = vmatmul.mubr.msk.f32.gmra.mxu1 %vm277_vm0, %v268_v24  ;;  %946 = vmatprep.subr.mxu1 %v237_v22 }
  0x4b   :  { %962 = vmatpush3.msra.mxu1 %v237_v22 }
  0xe2   :  { %v813_v26 = vpop.f32.mrf.mxu0 }
  0xe3   :  { %v148_v29 = vadd.f32 %v813_v26, %v673_v25 }
  0xe4   :  { %v142_v30 = vpop.f32.mrf.mxu0 }
  0xe5   :  { %v143_v31 = vadd.f32 %v673_v25, %v142_v30  ;;  %v222_v36 = vmax.f32 %v148_v29, 0.0  ;;  %v853_v29 = vpop.f32.mrf.mxu1 }
  0xe6   :  { %v816_v32 = vpop.f32.mrf.mxu0 }
  0xe7   :  { %v221_v33 = vmax.f32 %v143_v31, 0.0  ;;  %v158_v37 = vadd.f32 %v816_v32, %v673_v25  ;;  %v392_v30 = vpop.f32.mrf.mxu1 }
  0xe8   :  { %v152_v38 = vpop.f32.mrf.mxu0 }
  0xe9   :  { %v153_v39 = vadd.f32 %v673_v25, %v152_v38  ;;  %907 = vmatprep.mubr.f32.mxu0 %v221_v33  ;;  %v224_v44 = vmax.f32 %v158_v37, 0.0  ;;  %v856_v31 = vpop.f32.mrf.mxu1 }
  0xea   :  { %v819_v41 = vpop.f32.mrf.mxu0  ;;  %908 = vmatmul.mubr.f32.vlgmr.msra.gmra.mxu0 %v222_v36 }
  0xeb   :  { %v223_v43 = vmax.f32 %v153_v39, 0.0  ;;  %v168_v45 = vadd.f32 %v819_v41, %v673_v25  ;;  %v402_v32 = vpop.f32.mrf.mxu1 }
  0xec   :  { %v162_v47 = vpop.f32.mrf.mxu0 }
  0xed   :  { %v163_v49 = vadd.f32 %v673_v25, %v162_v47  ;;  %910 = vmatprep.mubr.f32.mxu0 %v223_v43  ;;  %v226_v52 = vmax.f32 %v168_v45, 0.0  ;;  %v859_v33 = vpop.f32.mrf.mxu1 }
  0xee   :  { %v822_v50 = vpop.f32.mrf.mxu0  ;;  %911 = vmatmul.mubr.f32.gmra.mxu0 %v224_v44 }
  0xef   :  { %v225_v51 = vmax.f32 %v163_v49, 0.0  ;;  %v178_v54 = vadd.f32 %v822_v50, %v673_v25  ;;  %v412_v36 = vpop.f32.mrf.mxu1  ;;  %v1288_v50 = vld [vmem:[%s1383_s5 + $0x1] ss:$0 sm:$0xff] }
  0xf0   :  { %v172_v56 = vpop.f32.mrf.mxu0 }
  0xf1   :  { %v173_v57 = vadd.f32 %v673_v25, %v172_v56  ;;  %913 = vmatprep.mubr.f32.mxu1 %v225_v51  ;;  %v228_v62 = vmax.f32 %v178_v54, 0.0  ;;  %v862_v37 = vpop.f32.mrf.mxu1 }
  0xf2   :  { %v825_v58 = vpop.f32.mrf.mxu0  ;;  %914 = vmatmul.mubr.f32.vlgmr.msra.gmra.mxu1 %v226_v52 }
  0xf3   :  { %v227_v59 = vmax.f32 %v173_v57, 0.0  ;;  %v188_v63 = vadd.f32 %v825_v58, %v673_v25  ;;  %v422_v38 = vpop.f32.mrf.mxu1 }
  0xf4   :  { %v182_v0 = vpop.f32.mrf.mxu0 }
  0xf5   :  { %v183_v1 = vadd.f32 %v673_v25, %v182_v0  ;;  %916 = vmatprep.mubr.f32.mxu1 %v227_v59  ;;  %v230_v7 = vmax.f32 %v188_v63, 0.0 }
  0xf6   :  { %v828_v3 = vpop.f32.mrf.mxu0  ;;  %917 = vmatmul.mubr.f32.gmra.mxu1 %v228_v62 }
  0xf7   :  { %v229_v6 = vmax.f32 %v183_v1, 0.0  ;;  %v198_v8 = vadd.f32 %v828_v3, %v673_v25 }
  0xf8   :  { %v192_v10 = vpop.f32.mrf.mxu0  ;;  %v865_v39 = vpop.f32.mrf.mxu1 }
  0xf9   :  { %v193_v11 = vadd.f32 %v673_v25, %v192_v10  ;;  %919 = vmatprep.mubr.f32.mxu1 %v229_v6  ;;  %v232_v14 = vmax.f32 %v198_v8, 0.0 }
  0xfa   :  { %v831_v12 = vpop.f32.mrf.mxu0  ;;  %920 = vmatmul.mubr.f32.gmra.mxu1 %v230_v7  ;;  %v432_v41 = vpop.f32.mrf.mxu1 }
  0xfb   :  { %v231_v13 = vmax.f32 %v193_v11, 0.0  ;;  %v208_v15 = vadd.f32 %v831_v12, %v673_v25 }
  0xfc   :  { %v202_v16 = vpop.f32.mrf.mxu0 }
  0xfd   :  { %v203_v17 = vadd.f32 %v673_v25, %v202_v16  ;;  %922 = vmatprep.mubr.f32.mxu1 %v231_v13  ;;  %v234_v20 = vmax.f32 %v208_v15, 0.0 }
  0xfe   :  { %v834_v18 = vpop.f32.mrf.mxu0  ;;  %923 = vmatmul.mubr.f32.gmra.mxu1 %v232_v14 }
  0xff   :  { %v233_v19 = vmax.f32 %v203_v17, 0.0  ;;  %v218_v21 = vadd.f32 %v834_v18, %v673_v25 }
 0x100   :  { %v212_v22 = vpop.f32.mrf.mxu0 }
 0x101   :  { %v213_v23 = vadd.f32 %v673_v25, %v212_v22  ;;  %925 = vmatprep.mubr.f32.mxu1 %v233_v19  ;;  %v236_v26 = vmax.f32 %v218_v21, 0.0  ;;  %v868_v43 = vpop.f32.mrf.mxu1 }
 0x102   :  { %926 = vmatmul.mubr.f32.gmra.mxu1 %v234_v20 }
 0x103   :  { %v235_v24 = vmax.f32 %v213_v23, 0.0  ;;  %v442_v44 = vpop.f32.mrf.mxu1 }
 0x105   :  { %928 = vmatprep.mubr.f32.mxu1 %v235_v24 }
 0x106   :  { %929 = vmatmul.mubr.f32.gmra.mxu1 %v236_v26  ;;  %v1281_v45 = vpop.f32.mrf.mxu1 }
 0x108   :  { %v1283_v25 = vpop.f32.mrf.mxu1 }
 0x10a   :  { %v1290_v51 = vpop.f32.mrf.mxu1 }
 0x10c   :  { %v1295_v63 = vpop.f32.mrf.mxu1 }
 0x1aa   :  { %v909_v47 = vpop.f32.mrf.mxu0 }
 0x1ab   :  { %v543_v49 = vadd.f32 %v909_v47, %v853_v29 }
 0x1ac   :  { %v537_v52 = vpop.f32.mrf.mxu0 }
 0x1ad   :  { %v617_v54 = vadd.f32 %v543_v49, %v1082_v27  ;;  %v538_v56 = vadd.f32 %v537_v52, %v392_v30 }
 0x1ae   :  { %v912_v57 = vpop.f32.mrf.mxu0 }
 0x1af   :  { %v638_v58 = vadd.f32 %v1288_v50, %v617_v54  ;;  %v616_v59 = vadd.f32 %v538_v56, %v1013_v4  ;;  %v553_v62 = vadd.f32 %v912_v57, %v856_v31 }
 0x1b0   :  { %v547_v0 = vpop.f32.mrf.mxu0 }
 0x1b1   :  { %654 = vst [vmem:[%s1384_s6 + $0x8] sm:$0xff] %v638_v58  ;;  %v637_v1 = vadd.f32 %v1288_v50, %v616_v59  ;;  %v619_v3 = vadd.f32 %v553_v62, %v1105_v34  ;;  %v548_v6 = vadd.f32 %v547_v0, %v402_v32 }
 0x1b2   :  { %v915_v27 = vpop.f32.mrf.mxu1 }
 0x1b3   :  { %653 = vst [vmem:[%s1384_s6] sm:$0xff] %v637_v1  ;;  %v640_v4 = vadd.f32 %v1288_v50, %v619_v3  ;;  %v618_v7 = vadd.f32 %v548_v6, %v1087_v28  ;;  %v563_v8 = vadd.f32 %v915_v27, %v859_v33 }
 0x1b4   :  { %v557_v10 = vpop.f32.mrf.mxu1 }
 0x1b5   :  { %656 = vst [vmem:[%s1384_s6 + $0x18] sm:$0xff] %v640_v4  ;;  %v639_v11 = vadd.f32 %v1288_v50, %v618_v7  ;;  %v621_v34 = vadd.f32 %v563_v8, %v1124_v40  ;;  %v558_v12 = vadd.f32 %v557_v10, %v412_v36 }
 0x1b6   :  { %v918_v13 = vpop.f32.mrf.mxu1 }
 0x1b7   :  { %655 = vst [vmem:[%s1384_s6 + $0x10] sm:$0xff] %v639_v11  ;;  %v642_v14 = vadd.f32 %v1288_v50, %v621_v34  ;;  %v620_v28 = vadd.f32 %v558_v12, %v1110_v35  ;;  %v573_v15 = vadd.f32 %v918_v13, %v862_v37 }
 0x1b8   :  { %v567_v16 = vpop.f32.mrf.mxu1 }
 0x1b9   :  { %658 = vst [vmem:[%s1384_s6 + $0x28] sm:$0xff] %v642_v14  ;;  %v641_v17 = vadd.f32 %v1288_v50, %v620_v28  ;;  %v623_v40 = vadd.f32 %v573_v15, %v1143_v46  ;;  %v568_v18 = vadd.f32 %v567_v16, %v422_v38 }
 0x1ba   :  { %v921_v19 = vpop.f32.mrf.mxu1 }
 0x1bb   :  { %657 = vst [vmem:[%s1384_s6 + $0x20] sm:$0xff] %v641_v17  ;;  %v644_v20 = vadd.f32 %v1288_v50, %v623_v40  ;;  %v622_v35 = vadd.f32 %v568_v18, %v1132_v42  ;;  %v583_v21 = vadd.f32 %v921_v19, %v865_v39 }
 0x1bc   :  { %v577_v22 = vpop.f32.mrf.mxu1 }
 0x1bd   :  { %660 = vst [vmem:[%s1384_s6 + $0x38] sm:$0xff] %v644_v20  ;;  %v643_v23 = vadd.f32 %v1288_v50, %v622_v35  ;;  %v625_v46 = vadd.f32 %v583_v21, %v1164_v53  ;;  %v578_v24 = vadd.f32 %v577_v22, %v432_v41 }
 0x1be   :  { %v924_v26 = vpop.f32.mrf.mxu1 }
 0x1bf   :  { %659 = vst [vmem:[%s1384_s6 + $0x30] sm:$0xff] %v643_v23  ;;  %v646_v29 = vadd.f32 %v1288_v50, %v625_v46  ;;  %v624_v42 = vadd.f32 %v578_v24, %v1151_v48  ;;  %v593_v30 = vadd.f32 %v924_v26, %v868_v43 }
 0x1c0   :  { %v587_v31 = vpop.f32.mrf.mxu1 }
 0x1c1   :  { %662 = vst [vmem:[%s1384_s6 + $0x48] sm:$0xff] %v646_v29  ;;  %v645_v32 = vadd.f32 %v1288_v50, %v624_v42  ;;  %v627_v53 = vadd.f32 %v593_v30, %v1186_v60  ;;  %v588_v33 = vadd.f32 %v587_v31, %v442_v44 }
 0x1c2   :  { %v927_v36 = vpop.f32.mrf.mxu1 }
 0x1c3   :  { %661 = vst [vmem:[%s1384_s6 + $0x40] sm:$0xff] %v645_v32  ;;  %v648_v37 = vadd.f32 %v1288_v50, %v627_v53  ;;  %v626_v48 = vadd.f32 %v588_v33, %v1172_v55  ;;  %v603_v38 = vadd.f32 %v927_v36, %v1281_v45 }
 0x1c4   :  { %v597_v39 = vpop.f32.mrf.mxu1 }
 0x1c5   :  { %664 = vst [vmem:[%s1384_s6 + $0x58] sm:$0xff] %v648_v37  ;;  %v647_v41 = vadd.f32 %v1288_v50, %v626_v48  ;;  %v629_v60 = vadd.f32 %v603_v38, %v1205_v2  ;;  %v598_v43 = vadd.f32 %v597_v39, %v1283_v25 }
 0x1c6   :  { %v930_v44 = vpop.f32.mrf.mxu1 }
 0x1c7   :  { %663 = vst [vmem:[%s1384_s6 + $0x50] sm:$0xff] %v647_v41  ;;  %v650_v55 = vadd.f32 %v1288_v50, %v629_v60  ;;  %v628_v45 = vadd.f32 %v598_v43, %v1191_v61  ;;  %v613_v47 = vadd.f32 %v930_v44, %v1290_v51 }
 0x1c8   :  { %v607_v49 = vpop.f32.mrf.mxu1 }
 0x1c9   :  { %666 = vst [vmem:[%s1384_s6 + $0x68] sm:$0xff] %v650_v55  ;;  %v649_v2 = vadd.f32 %v1288_v50, %v628_v45  ;;  %v631_v25 = vadd.f32 %v613_v47, %v1225_v9  ;;  %v608_v52 = vadd.f32 %v607_v49, %v1295_v63 }
 0x1cb   :  { %665 = vst [vmem:[%s1384_s6 + $0x60] sm:$0xff] %v649_v2  ;;  %v652_v54 = vadd.f32 %v1288_v50, %v631_v25  ;;  %v630_v61 = vadd.f32 %v608_v52, %v1213_v5 }
 0x1cd   :  { %668 = vst [vmem:[%s1384_s6 + $0x78] sm:$0xff] %v652_v54  ;;  %v651_v51 = vadd.f32 %v1288_v50, %v630_v61 }
 0x1cf   :  { %667 = vst [vmem:[%s1384_s6 + $0x70] sm:$0xff] %v651_v51 }

</bundles_post_ra>
